<compile_context>
chip_gen: v5e
topology: v5e:2x2
jax: 0.10.0
libtpu: 0.0.40
codegen_flags: <defaults>
</compile_context>

<pallas_src>
import functools

import jax
import jax.numpy as jnp
from jax.experimental import pallas as pl
from jax.experimental.pallas import tpu as pltpu

LANES = 128
NEG_INF = -1e30          # pad-column logit bias -> softmax probability exactly 0


def _round_up(n, m):
    return (n + m - 1) // m * m


def _slab_layout(value_dim, diff_dim):
    """Static row offsets of each weight block inside the packed bf16 slab."""
    vr = _round_up(value_dim, 16)      # bf16 sublane tile = 16 rows
    dr = _round_up(diff_dim, 16)
    r_wv = 0
    r_wd = r_wv + vr
    r_w1v = r_wd + dr
    r_w1d = r_w1v + LANES
    r_w2 = r_w1d + LANES
    r_w3 = r_w2 + LANES
    r_w4 = r_w3 + LANES
    n_rows = r_w4 + LANES
    return dict(vr=vr, dr=dr, r_wv=r_wv, r_wd=r_wd, r_w1v=r_w1v, r_w1d=r_w1d,
                r_w2=r_w2, r_w3=r_w3, r_w4=r_w4, n_rows=n_rows)


def pack_params(params, value_dim, diff_dim, hidden, output):
    """One-time packing: bf16 weight slab (n_rows,128) + f32 bias tile (8,128)."""
    assert hidden <= LANES and output <= LANES
    assert value_dim <= LANES and diff_dim <= LANES
    H = hidden
    lay = _slab_layout(value_dim, diff_dim)

    def block(w, rows):
        b = jnp.zeros((rows, LANES), jnp.float32)
        return b.at[:w.shape[0], :w.shape[1]].set(w)

    w_slab = jnp.concatenate([
        block(params["wv"], lay["vr"]),
        block(params["wd"], lay["dr"]),
        block(params["w1"][:H], LANES),      # multiplies v  (top half of W1)
        block(params["w1"][H:], LANES),      # multiplies d  (bottom half of W1)
        block(params["w2"], LANES),
        block(params["w3"], LANES),
        block(params["w4"], LANES),
    ], axis=0).astype(jnp.bfloat16)
    assert w_slab.shape == (lay["n_rows"], LANES)

    b4_row = jnp.full((LANES,), NEG_INF, jnp.float32).at[:output].set(params["b4"][0])
    biases = jnp.zeros((8, LANES), jnp.float32)
    biases = biases.at[0, :H].set(params["bv"][0])
    biases = biases.at[1, :H].set(params["bd"][0])
    biases = biases.at[2, :H].set(params["b1"][0])
    biases = biases.at[3, :H].set(params["b2"][0])
    biases = biases.at[4, :H].set(params["b3"][0])
    biases = biases.at[5].set(b4_row)
    return w_slab, biases


def make_kernel(value_dim, diff_dim):
    lay = _slab_layout(value_dim, diff_dim)

    def kernel(vx_ref, dx_ref, w_ref, b_ref, out_ref):
        bf16, f32 = jnp.bfloat16, jnp.float32
        dot = functools.partial(jnp.dot, preferred_element_type=f32)
        relu = lambda x: jnp.maximum(x, 0.0)

        # single (8,128) f32 bias tile, rows sliced in-register
        bias = b_ref[...]
        bv, bd = bias[0:1, :], bias[1:2, :]
        b1, b2, b3, b4 = bias[2:3, :], bias[3:4, :], bias[4:5, :], bias[5:6, :]

        # weight views: 16-row / full-lane aligned static slices (zero-cost)
        wv = w_ref[lay["r_wv"]:lay["r_wv"] + value_dim, :]
        wd = w_ref[lay["r_wd"]:lay["r_wd"] + diff_dim, :]
        w1v = w_ref[lay["r_w1v"]:lay["r_w1v"] + LANES, :]
        w1d = w_ref[lay["r_w1d"]:lay["r_w1d"] + LANES, :]
        w2 = w_ref[lay["r_w2"]:lay["r_w2"] + LANES, :]
        w3 = w_ref[lay["r_w3"]:lay["r_w3"] + LANES, :]
        w4 = w_ref[lay["r_w4"]:lay["r_w4"] + LANES, :]

        # encoders (independent dots; lane-padded hidden columns stay exactly 0)
        v = relu(dot(vx_ref[...].astype(bf16), wv) + bv)
        d = relu(dot(dx_ref[...].astype(bf16), wd) + bd)
        # cat([v,d], dim=1) @ W1  ==  v @ W1_top + d @ W1_bot
        h = relu(dot(v.astype(bf16), w1v) + dot(d.astype(bf16), w1d) + b1)
        h = relu(dot(h.astype(bf16), w2) + b2)
        h = relu(dot(h.astype(bf16), w3) + b3)
        logits = dot(h.astype(bf16), w4) + b4          # pad columns == -1e30

        # exact softmax over dim=1 (pad columns contribute exp(-huge) == 0)
        m = jnp.max(logits, axis=1, keepdims=True)
        e = jnp.exp(logits - m)
        out_ref[...] = e / jnp.sum(e, axis=1, keepdims=True)

    return kernel, lay["n_rows"]


def combined_model_forward(value_input, difficulty_input, w_slab, biases, *, output):
    B, value_dim = value_input.shape
    diff_dim = difficulty_input.shape[1]
    kernel, n_rows = make_kernel(value_dim, diff_dim)

    TB = min(_round_up(B, 8), 128)            # batch tile (MXU row dimension)
    Bpad = _round_up(B, TB)
    if Bpad != B:
        value_input = jnp.pad(value_input, ((0, Bpad - B), (0, 0)))
        difficulty_input = jnp.pad(difficulty_input, ((0, Bpad - B), (0, 0)))

    out = pl.pallas_call(
        kernel,
        grid=(Bpad // TB,),
        out_shape=jax.ShapeDtypeStruct((Bpad, LANES), jnp.float32),
        in_specs=[
            pl.BlockSpec((TB, value_dim), lambda i: (i, 0)),
            pl.BlockSpec((TB, diff_dim), lambda i: (i, 0)),
            # parameter blocks: constant index_map -> stay VMEM-resident across steps
            pl.BlockSpec((n_rows, LANES), lambda i: (0, 0)),
            pl.BlockSpec((8, LANES), lambda i: (0, 0)),
        ],
        out_specs=pl.BlockSpec((TB, LANES), lambda i: (i, 0)),
        compiler_params=pltpu.CompilerParams(dimension_semantics=("parallel",)),
    )(value_input, difficulty_input, w_slab, biases)
    # lane-dense padded softmax columns are exactly zero; slice to the real width
    return out[:B, :output]


def init_params(key, value_dim, difficulty_dim, hidden_size, output_size):
    """Deterministic synthetic parameter init (PyTorch-Linear style scaling)."""
    ks = jax.random.split(key, 12)

    def lin(kw, kb, fan_in, fan_out):
        lim = 1.0 / jnp.sqrt(jnp.float32(fan_in))
        w = jax.random.uniform(kw, (fan_in, fan_out), jnp.float32, -lim, lim)
        b = jax.random.uniform(kb, (1, fan_out), jnp.float32, -lim, lim)
        return w, b

    wv, bv = lin(ks[0], ks[1], value_dim, hidden_size)
    wd, bd = lin(ks[2], ks[3], difficulty_dim, hidden_size)
    w1, b1 = lin(ks[4], ks[5], 2 * hidden_size, hidden_size)
    w2, b2 = lin(ks[6], ks[7], hidden_size, hidden_size)
    w3, b3 = lin(ks[8], ks[9], hidden_size, hidden_size)
    w4, b4 = lin(ks[10], ks[11], hidden_size, output_size)
    return dict(wv=wv, bv=bv, wd=wd, bd=bd,
                w1=w1, b1=b1, w2=w2, b2=b2, w3=w3, b3=b3, w4=w4, b4=b4)


def reference_forward(value_input, difficulty_input, params):
    """Plain-JAX f32 reference mirroring the PyTorch forward."""
    relu = lambda x: jnp.maximum(x, 0.0)
    v = relu(value_input @ params["wv"] + params["bv"])
    d = relu(difficulty_input @ params["wd"] + params["bd"])
    combined = jnp.concatenate([v, d], axis=1)
    h = relu(combined @ params["w1"] + params["b1"])
    h = relu(h @ params["w2"] + params["b2"])
    h = relu(h @ params["w3"] + params["b3"])
    logits = h @ params["w4"] + params["b4"]
    return jax.nn.softmax(logits, axis=1)


if __name__ == "__main__":
    B = 8                # batch
    VALUE_DIM = 16       # value_input feature dim
    DIFF_DIM = 16        # difficulty_input feature dim
    HIDDEN = 32          # hidden_size
    OUTPUT = 4           # output_size

    key = jax.random.PRNGKey(0)
    k_v, k_d, k_p = jax.random.split(key, 3)
    value_input = jax.random.normal(k_v, (B, VALUE_DIM), jnp.float32)
    difficulty_input = jax.random.normal(k_d, (B, DIFF_DIM), jnp.float32)
    params = init_params(k_p, VALUE_DIM, DIFF_DIM, HIDDEN, OUTPUT)

    # one-time parameter packing (outside the hot path)
    w_slab, biases = jax.block_until_ready(
        pack_params(params, VALUE_DIM, DIFF_DIM, HIDDEN, OUTPUT))

    fwd = jax.jit(functools.partial(combined_model_forward, output=OUTPUT))
    out = jax.block_until_ready(fwd(value_input, difficulty_input, w_slab, biases))

    ref = reference_forward(value_input, difficulty_input, params)
    assert out.shape == (B, OUTPUT)
    # bf16 MXU operands (f32 accumulate / f32 epilogue) vs an all-f32 reference:
    # deviations are well below 1e-2 for this model scale.
    assert jnp.allclose(out, ref, atol=1e-2, rtol=1e-2), "mismatch vs reference"
    # exact division -> rows sum to 1 to f32 rounding
    assert jnp.allclose(jnp.sum(out, axis=1), jnp.ones((B,)), atol=1e-3)

    print("KERNEL_OK")
</pallas_src>

<mosaic_0001>
module attributes {stable_mosaic.version = 11 : i64} {
  func.func @kernel(%arg0: i32, %arg1: memref<8x16xf32, #tpu.memory_space<vmem>>, %arg2: memref<8x16xf32, #tpu.memory_space<vmem>>, %arg3: memref<672x128xbf16, #tpu.memory_space<vmem>>, %arg4: memref<8x128xf32, #tpu.memory_space<vmem>>, %arg5: memref<8x128xf32, #tpu.memory_space<vmem>>) attributes {dimension_semantics = [#tpu.dimension_semantics<parallel>], iteration_bounds = array<i64: 1>, scalar_prefetch = 0 : i64, scratch_operands = 0 : i64, tpu.core_type = #tpu.core_type<tc>, window_params = [{transform_indices = @transform_0, window_bounds = array<i64: 8, 16>}, {transform_indices = @transform_1, window_bounds = array<i64: 8, 16>}, {pipeline_mode = #tpu.pipeline_mode<synchronous>, transform_indices = @transform_2, window_bounds = array<i64: 672, 128>}, {pipeline_mode = #tpu.pipeline_mode<synchronous>, transform_indices = @transform_3, window_bounds = array<i64: 8, 128>}, {transform_indices = @transform_4, window_bounds = array<i64: 8, 128>}]} {
    %c0 = arith.constant 0 : index
    %c0_0 = arith.constant 0 : index
    %0 = vector.load %arg4[%c0, %c0_0] : memref<8x128xf32, #tpu.memory_space<vmem>>, vector<8x128xf32>
    %1 = vector.extract_strided_slice %0 {offsets = [0, 0], sizes = [1, 128], strides = [1, 1]} : vector<8x128xf32> to vector<1x128xf32>
    %2 = vector.extract_strided_slice %0 {offsets = [1, 0], sizes = [1, 128], strides = [1, 1]} : vector<8x128xf32> to vector<1x128xf32>
    %3 = vector.extract_strided_slice %0 {offsets = [2, 0], sizes = [1, 128], strides = [1, 1]} : vector<8x128xf32> to vector<1x128xf32>
    %4 = vector.extract_strided_slice %0 {offsets = [3, 0], sizes = [1, 128], strides = [1, 1]} : vector<8x128xf32> to vector<1x128xf32>
    %5 = vector.extract_strided_slice %0 {offsets = [4, 0], sizes = [1, 128], strides = [1, 1]} : vector<8x128xf32> to vector<1x128xf32>
    %6 = vector.extract_strided_slice %0 {offsets = [5, 0], sizes = [1, 128], strides = [1, 1]} : vector<8x128xf32> to vector<1x128xf32>
    %c0_1 = arith.constant 0 : index
    %c0_2 = arith.constant 0 : index
    %7 = vector.load %arg3[%c0_1, %c0_2] : memref<672x128xbf16, #tpu.memory_space<vmem>>, vector<16x128xbf16>
    %c16 = arith.constant 16 : index
    %c0_3 = arith.constant 0 : index
    %8 = vector.load %arg3[%c16, %c0_3] : memref<672x128xbf16, #tpu.memory_space<vmem>>, vector<16x128xbf16>
    %c32 = arith.constant 32 : index
    %c0_4 = arith.constant 0 : index
    %9 = vector.load %arg3[%c32, %c0_4] : memref<672x128xbf16, #tpu.memory_space<vmem>>, vector<128x128xbf16>
    %c160 = arith.constant 160 : index
    %c0_5 = arith.constant 0 : index
    %10 = vector.load %arg3[%c160, %c0_5] : memref<672x128xbf16, #tpu.memory_space<vmem>>, vector<128x128xbf16>
    %c288 = arith.constant 288 : index
    %c0_6 = arith.constant 0 : index
    %11 = vector.load %arg3[%c288, %c0_6] : memref<672x128xbf16, #tpu.memory_space<vmem>>, vector<128x128xbf16>
    %c416 = arith.constant 416 : index
    %c0_7 = arith.constant 0 : index
    %12 = vector.load %arg3[%c416, %c0_7] : memref<672x128xbf16, #tpu.memory_space<vmem>>, vector<128x128xbf16>
    %c544 = arith.constant 544 : index
    %c0_8 = arith.constant 0 : index
    %13 = vector.load %arg3[%c544, %c0_8] : memref<672x128xbf16, #tpu.memory_space<vmem>>, vector<128x128xbf16>
    %c0_9 = arith.constant 0 : index
    %c0_10 = arith.constant 0 : index
    %14 = vector.load %arg1[%c0_9, %c0_10] : memref<8x16xf32, #tpu.memory_space<vmem>>, vector<8x16xf32>
    %15 = arith.truncf %14 : vector<8x16xf32> to vector<8x16xbf16>
    %cst = arith.constant dense<0.000000e+00> : vector<8x128xf32>
    %16 = tpu.matmul %15, %7, %cst {dimension_numbers = #tpu.dot_dimension_numbers<[1], [0], [0], [1], [0, 0, 1, 1], [], []>} : vector<8x16xbf16>, vector<16x128xbf16>, vector<8x128xf32> -> vector<8x128xf32>
    %17 = vector.broadcast %1 : vector<1x128xf32> to vector<8x128xf32>
    %18 = arith.addf %16, %17 : vector<8x128xf32>
    %cst_11 = arith.constant 0.000000e+00 : f32
    %19 = vector.broadcast %cst_11 : f32 to vector<8x128xf32>
    %20 = arith.maximumf %18, %19 : vector<8x128xf32>
    %c0_12 = arith.constant 0 : index
    %c0_13 = arith.constant 0 : index
    %21 = vector.load %arg2[%c0_12, %c0_13] : memref<8x16xf32, #tpu.memory_space<vmem>>, vector<8x16xf32>
    %22 = arith.truncf %21 : vector<8x16xf32> to vector<8x16xbf16>
    %cst_14 = arith.constant dense<0.000000e+00> : vector<8x128xf32>
    %23 = tpu.matmul %22, %8, %cst_14 {dimension_numbers = #tpu.dot_dimension_numbers<[1], [0], [0], [1], [0, 0, 1, 1], [], []>} : vector<8x16xbf16>, vector<16x128xbf16>, vector<8x128xf32> -> vector<8x128xf32>
    %24 = vector.broadcast %2 : vector<1x128xf32> to vector<8x128xf32>
    %25 = arith.addf %23, %24 : vector<8x128xf32>
    %cst_15 = arith.constant 0.000000e+00 : f32
    %26 = vector.broadcast %cst_15 : f32 to vector<8x128xf32>
    %27 = arith.maximumf %25, %26 : vector<8x128xf32>
    %28 = arith.truncf %20 : vector<8x128xf32> to vector<8x128xbf16>
    %cst_16 = arith.constant dense<0.000000e+00> : vector<8x128xf32>
    %29 = tpu.matmul %28, %9, %cst_16 {dimension_numbers = #tpu.dot_dimension_numbers<[1], [0], [0], [1], [0, 0, 1, 1], [], []>} : vector<8x128xbf16>, vector<128x128xbf16>, vector<8x128xf32> -> vector<8x128xf32>
    %30 = arith.truncf %27 : vector<8x128xf32> to vector<8x128xbf16>
    %cst_17 = arith.constant dense<0.000000e+00> : vector<8x128xf32>
    %31 = tpu.matmul %30, %10, %cst_17 {dimension_numbers = #tpu.dot_dimension_numbers<[1], [0], [0], [1], [0, 0, 1, 1], [], []>} : vector<8x128xbf16>, vector<128x128xbf16>, vector<8x128xf32> -> vector<8x128xf32>
    %32 = arith.addf %29, %31 : vector<8x128xf32>
    %33 = vector.broadcast %3 : vector<1x128xf32> to vector<8x128xf32>
    %34 = arith.addf %32, %33 : vector<8x128xf32>
    %cst_18 = arith.constant 0.000000e+00 : f32
    %35 = vector.broadcast %cst_18 : f32 to vector<8x128xf32>
    %36 = arith.maximumf %34, %35 : vector<8x128xf32>
    %37 = arith.truncf %36 : vector<8x128xf32> to vector<8x128xbf16>
    %cst_19 = arith.constant dense<0.000000e+00> : vector<8x128xf32>
    %38 = tpu.matmul %37, %11, %cst_19 {dimension_numbers = #tpu.dot_dimension_numbers<[1], [0], [0], [1], [0, 0, 1, 1], [], []>} : vector<8x128xbf16>, vector<128x128xbf16>, vector<8x128xf32> -> vector<8x128xf32>
    %39 = vector.broadcast %4 : vector<1x128xf32> to vector<8x128xf32>
    %40 = arith.addf %38, %39 : vector<8x128xf32>
    %cst_20 = arith.constant 0.000000e+00 : f32
    %41 = vector.broadcast %cst_20 : f32 to vector<8x128xf32>
    %42 = arith.maximumf %40, %41 : vector<8x128xf32>
    %43 = arith.truncf %42 : vector<8x128xf32> to vector<8x128xbf16>
    %cst_21 = arith.constant dense<0.000000e+00> : vector<8x128xf32>
    %44 = tpu.matmul %43, %12, %cst_21 {dimension_numbers = #tpu.dot_dimension_numbers<[1], [0], [0], [1], [0, 0, 1, 1], [], []>} : vector<8x128xbf16>, vector<128x128xbf16>, vector<8x128xf32> -> vector<8x128xf32>
    %45 = vector.broadcast %5 : vector<1x128xf32> to vector<8x128xf32>
    %46 = arith.addf %44, %45 : vector<8x128xf32>
    %cst_22 = arith.constant 0.000000e+00 : f32
    %47 = vector.broadcast %cst_22 : f32 to vector<8x128xf32>
    %48 = arith.maximumf %46, %47 : vector<8x128xf32>
    %49 = arith.truncf %48 : vector<8x128xf32> to vector<8x128xbf16>
    %cst_23 = arith.constant dense<0.000000e+00> : vector<8x128xf32>
    %50 = tpu.matmul %49, %13, %cst_23 {dimension_numbers = #tpu.dot_dimension_numbers<[1], [0], [0], [1], [0, 0, 1, 1], [], []>} : vector<8x128xbf16>, vector<128x128xbf16>, vector<8x128xf32> -> vector<8x128xf32>
    %51 = vector.broadcast %6 : vector<1x128xf32> to vector<8x128xf32>
    %52 = arith.addf %50, %51 : vector<8x128xf32>
    %cst_24 = arith.constant dense<0xFF800000> : vector<8xf32>
    %53 = vector.multi_reduction <maximumf>, %52, %cst_24 [1] : vector<8x128xf32> to vector<8xf32>
    %54 = vector.shape_cast %53 : vector<8xf32> to vector<8x1xf32>
    %55 = vector.broadcast %54 : vector<8x1xf32> to vector<8x128xf32>
    %56 = arith.subf %52, %55 : vector<8x128xf32>
    %57 = math.exp %56 : vector<8x128xf32>
    %cst_25 = arith.constant dense<0.000000e+00> : vector<8xf32>
    %58 = vector.multi_reduction <add>, %57, %cst_25 [1] : vector<8x128xf32> to vector<8xf32>
    %59 = vector.shape_cast %58 : vector<8xf32> to vector<8x1xf32>
    %60 = vector.broadcast %59 : vector<8x1xf32> to vector<8x128xf32>
    %61 = arith.divf %57, %60 : vector<8x128xf32>
    %c0_26 = arith.constant 0 : index
    %c0_27 = arith.constant 0 : index
    %62 = vector.load %arg5[%c0_26, %c0_27] : memref<8x128xf32, #tpu.memory_space<vmem>>, vector<8x128xf32>
    tpu.vector_store %arg5[%c0_26, %c0_27], %61 {strides = array<i32>} : memref<8x128xf32, #tpu.memory_space<vmem>>, vector<8x128xf32>,
    return
  }
  func.func @transform_0(%arg0: i32) -> (i32, i32) {
    %c0_i32 = arith.constant 0 : i32
    %c0_i32_0 = arith.constant 0 : i32
    return %arg0, %c0_i32 : i32, i32
  }
  func.func @transform_1(%arg0: i32) -> (i32, i32) {
    %c0_i32 = arith.constant 0 : i32
    %c0_i32_0 = arith.constant 0 : i32
    return %arg0, %c0_i32 : i32, i32
  }
  func.func @transform_2(%arg0: i32) -> (i32, i32) {
    %c0_i32 = arith.constant 0 : i32
    %c0_i32_0 = arith.constant 0 : i32
    %c0_i32_1 = arith.constant 0 : i32
    return %c0_i32, %c0_i32_0 : i32, i32
  }
  func.func @transform_3(%arg0: i32) -> (i32, i32) {
    %c0_i32 = arith.constant 0 : i32
    %c0_i32_0 = arith.constant 0 : i32
    %c0_i32_1 = arith.constant 0 : i32
    return %c0_i32, %c0_i32_0 : i32, i32
  }
  func.func @transform_4(%arg0: i32) -> (i32, i32) {
    %c0_i32 = arith.constant 0 : i32
    %c0_i32_0 = arith.constant 0 : i32
    return %arg0, %c0_i32 : i32, i32
  }
}

</mosaic_0001>

<bundles_post_ra>
// kernel: combined_model_forward.1
= control target key start
LH: loop header
LB: loop body
LE: loop exit
PB: predicated region body
PF: predicated region fallthrough
CT: control target
= control target key end

     0   :  { %9 = vsyncpa [#allocation3], 0  ;;  %s939_s0 = inlined_call_operand.hbm [shape: f32[8,16], index: 0, kind: input, shape index: {}]   ;;  %s940_s1 = inlined_call_operand.hbm [shape: f32[8,16], index: 1, kind: input, shape index: {}]   ;;  %s941_s2 = inlined_call_operand.hbm [shape: bf16[672,128], index: 2, kind: input, shape index: {}]   ;;  %s942_s3 = inlined_call_operand.hbm [shape: f32[8,128], index: 3, kind: input, shape index: {}]   ;;  %s943_s4 = inlined_call_operand.vmem [shape: f32[8,128], index: 4, kind: output, shape index: {}]  }
   0x1   :  { %10 = vsyncpa [#allocation5], 0  ;;  %s28_s17 = sshll.u32 %s940_s1, 4  ;;  %s29_s17 = int_to_ptr.hbm [resolvable:$true] %s28_s17 }
   0x2   :  { %11 = vsyncpa [#allocation8], 0  ;;  %s885_s18 = smov [#allocation4]   ;;  %s17_s22 = sshll.u32 %s939_s0, 4  ;;  %s18_s22 = int_to_ptr.hbm [resolvable:$true] %s17_s22 }
   0x3   :  { %s30_s19 = sshll.u32 %s885_s18, 4  ;;  %s886_s23 = smov [#allocation2]   ;;  %s31_s19 = int_to_ptr.vmem [resolvable:$true] %s30_s19 }
   0x4   :  { %33 = dma.hbm_to_vmem [thread:$0]  %s29_s17, 128, %s31_s19, [#allocation5]  }
   0x5   :  { %s19_s24 = sshll.u32 %s886_s23, 4  ;;  %s38_s27 = sshll.u32 %s941_s2, 4  ;;  %s20_s24 = int_to_ptr.vmem [resolvable:$true] %s19_s24  ;;  %s39_s27 = int_to_ptr.hbm [resolvable:$true] %s38_s27 }
   0x6   :  { %22 = dma.hbm_to_vmem [thread:$0]  %s18_s22, 128, %s20_s24, [#allocation3]  }
   0x7   :  { %s887_s1 = smov [#allocation6]   ;;  %s52_s5 = sshll.u32 %s942_s3, 4  ;;  %s53_s5 = int_to_ptr.hbm [resolvable:$true] %s52_s5 }
   0x8   :  { %s40_s28 = sshll.u32 %s887_s1, 4  ;;  %s888_s6 = smov 64   ;;  %s41_s28 = int_to_ptr.vmem [resolvable:$true] %s40_s28 }
   0x9   :  { %s889_s0 = smov 4   ;;  %s890_s7 = smov [#allocation7]  }
   0xa   :  { %46 = dma.hbm_to_vmem [thread:$0]  %s39_s27, 5376, %s41_s28, [#allocation5], %s888_s6, %s888_s6, %s889_s0  }
   0xb   :  { %s54_s8 = sshll.u32 %s890_s7, 4  ;;  %s55_s8 = int_to_ptr.vmem [resolvable:$true] %s54_s8 }
   0xc   :  { %57 = dma.hbm_to_vmem [thread:$0]  %s53_s5, 128, %s55_s8, [#allocation8]  }
   0xd   :  { %879 = dma.done.wait [#allocation3], 128  }
   0xe   :  { %880 = vsyncadd [#allocation3], 4294967168 }
   0xf   :  { %881 = dma.done.wait [#allocation5], 5504  }
  0x10   :  { %882 = vsyncadd [#allocation5], 4294961792 }
  0x11   :  { %883 = dma.done.wait [#allocation8], 128  }
  0x12   :  { %884 = vsyncadd [#allocation8], 4294967168  ;;  %v731_v0 = vld [vmem:[#allocation6] sm:$0xff]  ;;  %v732_v1 = vld [vmem:[#allocation6 + $0x8] sm:$0xff]  ;;  %vm169_vm0 = vcmask 130048  }
  0x13   :  { %v160_v2 = vld [vmem:[#allocation2] sm:$0xff]  ;;  %v187_v4 = vld [vmem:[#allocation4] sm:$0xff]  ;;  %v748_v5 = vld [vmem:[#allocation6 + $0x88] sm:$0xff]  ;;  %180 = vmatpush.bf16.msra.mxu0 %v731_v0  ;;  %206 = vmatpush.bf16.msra.mxu1 %v732_v1 }
  0x14   :  { %v161_v3 = vpack.c.bf16 %v160_v2, %v160_v2  ;;  %v740_v6 = vld [vmem:[#allocation6 + $0x48] sm:$0xff]  ;;  %v188_v7 = vpack.c.bf16 %v187_v4, %v187_v4  ;;  %263 = vmatpush.bf16.msra.mxu2 %v748_v5  ;;  %v747_v8 = vld [vmem:[#allocation6 + $0x80] sm:$0xff]  ;;  %v746_v10 = vld [vmem:[#allocation6 + $0x78] sm:$0xff] }
  0x15   :  { %324 = vmatpush.bf16.msra.mxu3 %v740_v6  ;;  %v739_v9 = vld [vmem:[#allocation6 + $0x40] sm:$0xff]  ;;  %v738_v11 = vld [vmem:[#allocation6 + $0x38] sm:$0xff]  ;;  %v745_v12 = vld [vmem:[#allocation6 + $0x70] sm:$0xff] }
  0x16   :  { %565 = vmatmul.msk.bf16.vlgmr.msra.gmra.mxu0 %vm169_vm0, %v161_v3  ;;  %570 = vmatmul.msk.bf16.vlgmr.msra.gmra.mxu1 %vm169_vm0, %v188_v7  ;;  %v737_v13 = vld [vmem:[#allocation6 + $0x30] sm:$0xff]  ;;  %v744_v14 = vld [vmem:[#allocation6 + $0x68] sm:$0xff]  ;;  %v743_v16 = vld [vmem:[#allocation6 + $0x60] sm:$0xff] }
  0x17   :  { %v736_v15 = vld [vmem:[#allocation6 + $0x28] sm:$0xff]  ;;  %v735_v17 = vld [vmem:[#allocation6 + $0x20] sm:$0xff]  ;;  %v742_v18 = vld [vmem:[#allocation6 + $0x58] sm:$0xff] }
  0x18   :  { %264 = vmatpush.bf16.msra.mxu2 %v747_v8  ;;  %v734_v19 = vld [vmem:[#allocation6 + $0x18] sm:$0xff]  ;;  %v741_v20 = vld [vmem:[#allocation6 + $0x50] sm:$0xff]  ;;  %v756_v22 = vld [vmem:[#allocation6 + $0xc8] sm:$0xff] }
  0x19   :  { %325 = vmatpush.bf16.msra.mxu3 %v739_v9  ;;  %v733_v21 = vld [vmem:[#allocation6 + $0x10] sm:$0xff]  ;;  %390 = vmatpush.bf16.msrb.mxu0 %v756_v22  ;;  %v755_v23 = vld [vmem:[#allocation6 + $0xc0] sm:$0xff]  ;;  %v754_v24 = vld [vmem:[#allocation6 + $0xb8] sm:$0xff] }
  0x1a   :  { %v753_v25 = vld [vmem:[#allocation6 + $0xb0] sm:$0xff]  ;;  %v752_v26 = vld [vmem:[#allocation6 + $0xa8] sm:$0xff]  ;;  %v751_v28 = vld [vmem:[#allocation6 + $0xa0] sm:$0xff] }
  0x1b   :  { %v928_v27 = vld [vmem:[#allocation7] sm:$0xff]  ;;  %v750_v41 = vld [vmem:[#allocation6 + $0x98] sm:$0xff]  ;;  %v764_v43 = vld [vmem:[#allocation6 + $0x108] sm:$0xff] }
  0x1c   :  { %265 = vmatpush.bf16.msra.mxu2 %v746_v10  ;;  %v162_v29 = vperm.slane %v928_v27, 0  ;;  %v189_v30 = vperm.slane %v928_v27, 1  ;;  %v749_v42 = vld [vmem:[#allocation6 + $0x90] sm:$0xff]  ;;  %454 = vmatpush.bf16.msrb.mxu1 %v764_v43  ;;  %v763_v44 = vld [vmem:[#allocation6 + $0x100] sm:$0xff]  ;;  %v762_v45 = vld [vmem:[#allocation6 + $0xf8] sm:$0xff]  ;;  %v337_v49 = vperm.slane %v928_v27, 2 }
  0x1d   :  { %326 = vmatpush.bf16.msra.mxu3 %v738_v11  ;;  %391 = vmatpush.bf16.msrb.mxu0 %v755_v23  ;;  %v761_v46 = vld [vmem:[#allocation6 + $0xf0] sm:$0xff]  ;;  %v760_v47 = vld [vmem:[#allocation6 + $0xe8] sm:$0xff]  ;;  %v759_v48 = vld [vmem:[#allocation6 + $0xe0] sm:$0xff]  ;;  %v341_v2 = vperm.slane %v928_v27, 3  ;;  %v405_v10 = vperm.slane %v928_v27, 4 }
  0x1e   :  { %v758_v58 = vld [vmem:[#allocation6 + $0xd8] sm:$0xff]  ;;  %v757_v59 = vld [vmem:[#allocation6 + $0xd0] sm:$0xff]  ;;  %v772_v60 = vld [vmem:[#allocation6 + $0x148] sm:$0xff] }
  0x1f   :  { %v771_v61 = vld [vmem:[#allocation6 + $0x140] sm:$0xff]  ;;  %v770_v62 = vld [vmem:[#allocation6 + $0x138] sm:$0xff]  ;;  %v769_v63 = vld [vmem:[#allocation6 + $0x130] sm:$0xff] }
  0x20   :  { %266 = vmatpush.bf16.msra.mxu2 %v745_v12  ;;  %455 = vmatpush.bf16.msrb.mxu1 %v763_v44  ;;  %v768_v0 = vld [vmem:[#allocation6 + $0x128] sm:$0xff]  ;;  %v767_v1 = vld [vmem:[#allocation6 + $0x120] sm:$0xff]  ;;  %v766_v8 = vld [vmem:[#allocation6 + $0x118] sm:$0xff] }
  0x21   :  { %327 = vmatpush.bf16.msra.mxu3 %v737_v13  ;;  %392 = vmatpush.bf16.msrb.mxu0 %v754_v24  ;;  %v765_v9 = vld [vmem:[#allocation6 + $0x110] sm:$0xff] }
  0x24   :  { %267 = vmatpush.bf16.msra.mxu2 %v744_v14  ;;  %456 = vmatpush.bf16.msrb.mxu1 %v762_v45 }
  0x25   :  { %328 = vmatpush.bf16.msra.mxu3 %v736_v15  ;;  %393 = vmatpush.bf16.msrb.mxu0 %v753_v25 }
  0x28   :  { %268 = vmatpush.bf16.msra.mxu2 %v743_v16  ;;  %457 = vmatpush.bf16.msrb.mxu1 %v761_v46  ;;  %v469_v16 = vperm.slane %v928_v27, 5 }
  0x29   :  { %329 = vmatpush.bf16.msra.mxu3 %v735_v17  ;;  %394 = vmatpush.bf16.msrb.mxu0 %v752_v26 }
  0x2c   :  { %269 = vmatpush.bf16.msra.mxu2 %v742_v18  ;;  %458 = vmatpush.bf16.msrb.mxu1 %v760_v47 }
  0x2d   :  { %330 = vmatpush.bf16.msra.mxu3 %v734_v19  ;;  %395 = vmatpush.bf16.msrb.mxu0 %v751_v28 }
  0x30   :  { %270 = vmatpush.bf16.msra.mxu2 %v741_v20  ;;  %459 = vmatpush.bf16.msrb.mxu1 %v759_v48 }
  0x31   :  { %331 = vmatpush.bf16.msra.mxu3 %v733_v21  ;;  %396 = vmatpush.bf16.msrb.mxu0 %v750_v41 }
  0x34   :  { %460 = vmatpush.bf16.msrb.mxu1 %v758_v58  ;;  %518 = vmatpush.bf16.msrb.mxu2 %v772_v60 }
  0x35   :  { %397 = vmatpush.bf16.msrb.mxu0 %v749_v42 }
  0x38   :  { %461 = vmatpush.bf16.msrb.mxu1 %v757_v59  ;;  %519 = vmatpush.bf16.msrb.mxu2 %v771_v61 }
  0x3c   :  { %520 = vmatpush.bf16.msrb.mxu2 %v770_v62 }
  0x40   :  { %521 = vmatpush.bf16.msrb.mxu2 %v769_v63 }
  0x44   :  { %522 = vmatpush.bf16.msrb.mxu2 %v768_v0 }
  0x48   :  { %523 = vmatpush.bf16.msrb.mxu2 %v767_v1 }
  0x4c   :  { %524 = vmatpush.bf16.msrb.mxu2 %v766_v8 }
  0x50   :  { %525 = vmatpush.bf16.msrb.mxu2 %v765_v9 }
  0x93   :  { %v182_v31 = vpop.f32.mrf.mxu0  ;;  %v208_v32 = vpop.f32.mrf.mxu1 }
  0x94   :  { %v183_v33 = vadd.f32 %v182_v31, %v162_v29  ;;  %v209_v34 = vadd.f32 %v208_v32, %v189_v30 }
  0x96   :  { %v186_v35 = vmax.f32 %v183_v33, 0.0  ;;  %v212_v36 = vmax.f32 %v209_v34, 0.0 }
  0x98   :  { %v214_v37 = vpack.c.bf16 %v212_v36, %v212_v36  ;;  %v213_v38 = vpack.c.bf16 %v186_v35, %v186_v35 }
  0x9a   :  { %271 = vmatmul.bf16.vlgmr.msra.gmra.mxu2 %v214_v37  ;;  %332 = vmatmul.bf16.vlgmr.msra.gmra.mxu3 %v213_v38 }
  0x9b   :  { %v184_v39 = vpop.f32.mrf.mxu0  ;;  %v210_v40 = vpop.f32.mrf.mxu1 }
 0x11d   :  { %v272_v50 = vpop.f32.mrf.mxu2  ;;  %v333_v51 = vpop.f32.mrf.mxu3 }
 0x11e   :  { %v334_v52 = vadd.f32 %v333_v51, %v272_v50 }
 0x120   :  { %v338_v53 = vadd.f32 %v337_v49, %v334_v52 }
 0x122   :  { %v339_v54 = vmax.f32 %v338_v53, 0.0 }
 0x124   :  { %v340_v55 = vpack.c.bf16 %v339_v54, %v339_v54 }
 0x125   :  { %v274_v56 = vpop.f32.mrf.mxu2  ;;  %v335_v57 = vpop.f32.mrf.mxu3 }
 0x126   :  { %398 = vmatmul.bf16.vlgmr.msrb.gmra.mxu0 %v340_v55 }
 0x1a3   :  { %v399_v3 = vpop.f32.mrf.mxu0 }
 0x1a4   :  { %v400_v4 = vadd.f32 %v399_v3, %v341_v2 }
 0x1a6   :  { %v403_v5 = vmax.f32 %v400_v4, 0.0 }
 0x1a8   :  { %v404_v6 = vpack.c.bf16 %v403_v5, %v403_v5 }
 0x1aa   :  { %462 = vmatmul.bf16.vlgmr.msrb.gmra.mxu1 %v404_v6 }
 0x1ab   :  { %v401_v7 = vpop.f32.mrf.mxu0 }
 0x227   :  { %v463_v11 = vpop.f32.mrf.mxu1 }
 0x228   :  { %v464_v12 = vadd.f32 %v463_v11, %v405_v10 }
 0x22a   :  { %v467_v13 = vmax.f32 %v464_v12, 0.0 }
 0x22c   :  { %v468_v14 = vpack.c.bf16 %v467_v13, %v467_v13 }
 0x22e   :  { %526 = vmatmul.bf16.vlgmr.msrb.gmra.mxu2 %v468_v14 }
 0x22f   :  { %v465_v15 = vpop.f32.mrf.mxu1 }
 0x2b1   :  { %v527_v17 = vpop.f32.mrf.mxu2 }
 0x2b2   :  { %v528_v18 = vadd.f32 %v527_v17, %v469_v16 }
 0x2b4   :  { %531 = vmax.xlane.f32.xlu0 %v528_v18 }
 0x2b9   :  { %v529_v19 = vpop.f32.mrf.mxu2 }
 0x327   :  { %v532_v20 = vpop.xlane.xlu0 %531 }
 0x328   :  { %v533_v21 = vsub.f32 %v528_v18, %v532_v20 }
 0x32a   :  { %v534_v22 = vmul.f32 1.442695, %v533_v21 }
 0x32c   :  { %779 = vpow2.f32 %v534_v22 }
 0x332   :  { %v780_v23 = vpop.eup %779 }
 0x333   :  { %536 = vadd.xlane.f32.xlu0 %v780_v23 }
 0x3a6   :  { %v537_v24 = vpop.xlane.xlu0 %536 }
 0x3a7   :  { %781 = vrcp.f32 %v537_v24  ;;  %v549_v29 = vand.u32 2147483648, %v537_v24  ;;  %v547_v31 = vand.u32 2147483647, %v537_v24  ;;  %vm543_vm2 = vweird.f32 %v537_v24 }
 0x3a9   :  { %v550_v32 = vor.u32 1.1754944e-38, %v549_v29  ;;  %vm548_vm4 = vcmp.eq.f32.partialorder %v547_v31, 8.507059e+37 }
 0x3ad   :  { %v782_v25 = vpop.eup %781 }
 0x3ae   :  { %v539_v26 = vmul.f32 %v782_v25, %v537_v24  ;;  %vm544_vm1 = vweird.f32 %v782_v25 }
 0x3af   :  { %vm545_vm3 = vmor %vm543_vm2, %vm544_vm1 }
 0x3b0   :  { %v540_v28 = vsub.f32 1.0, %v539_v26 }
 0x3b2   :  { %v541_v30 = vmul.f32 %v782_v25, %v540_v28 }
 0x3b4   :  { %v542_v27 = vadd.f32 %v782_v25, %v541_v30 }
 0x3b6   :  { %v546_v33 = vsel %vm545_vm3, %v782_v25, %v542_v27 }
 0x3b7   :  { %v551_v34 = vsel %vm548_vm4, %v550_v32, %v546_v33 }
 0x3b8   :  { %v552_v35 = vmul.f32 %v780_v23, %v551_v34 }
 0x3ba   :  { %553 = vst [vmem:[%s943_s4] sm:$0xff] %v552_v35 }
 0x3bb   :  { %558 = vsyncpa [#allocation3], 1 }
 0x3bc   :  { %559 = vsyncpa [#allocation5], 1 }
 0x3bd   :  { %560 = vsyncpa [#allocation8], 1 }

</bundles_post_ra>
